<compile_context>
chip_gen: v7x
topology: tpu7x:2x2x1
jax: 0.10.0
libtpu: 0.0.40
codegen_flags: <defaults>
</compile_context>

<pallas_src>
import jax
import jax.numpy as jnp
from jax import lax
from jax.experimental import pallas as pl
from jax.experimental.pallas import tpu as pltpu

BN_EPS = 1e-5
LANE = 128


# -----------------------------------------------------------------------------
# helpers
# -----------------------------------------------------------------------------
def _round_up(x, m):
    return (x + m - 1) // m * m


def _select_tuning():
    """(vmem_limit_bytes, row_tile) per TPU generation."""
    try:
        cap = pltpu.get_tpu_info().vmem_capacity_bytes
    except Exception:
        cap = 64 * 1024 * 1024
    if cap >= 100 * 1024 * 1024:               # v5e / v6e: 128 MiB physical
        return 96 * 1024 * 1024, 1024
    return 48 * 1024 * 1024, 512               # v7x: 64 MiB physical


def _pick_row_tile(rows, target):
    """Largest divisor of `rows` <= target, preferring multiples of 256, then 8."""
    target = min(target, max(rows // 2, 8))    # keep >= 2 grid steps if possible
    for align in (256, 8):
        start = (min(target, rows) // align) * align
        for tm in range(start, align - 1, -align):
            if rows % tm == 0:
                return tm
    # Pathological (rows not a multiple of 8): single tile.
    return rows


def _pick_band(H, W, target_rows):
    """Largest TH dividing H with TH*W <= target and TH*W a multiple of 8."""
    target = min(target_rows, max((H * W) // 2, 8))   # >= 2 bands if possible
    for th in range(H, 0, -1):
        if H % th == 0 and (th * W) % 8 == 0 and th * W <= target:
            return th
    return H


def _padvec(v, n):
    v = v.reshape(-1).astype(jnp.float32)
    return jnp.pad(v, (0, n - v.shape[0]))


def _stats_to_affine(partials, count, gamma, beta):
    """Combine per-tile (sum, sumsq) partials -> BN scale/shift, shape (1, C)."""
    s = jnp.sum(partials.astype(jnp.float32), axis=0)          # (2, C)
    mean = s[0] / count
    var = jnp.maximum(s[1] / count - mean * mean, 0.0)          # single-pass var
    scale = gamma.astype(jnp.float32) * lax.rsqrt(var + BN_EPS)
    shift = beta.astype(jnp.float32) - mean * scale
    return scale.reshape(1, -1), shift.reshape(1, -1)


def _partial_stats(h):
    """(1, 2, C) per-tile sum / sum-of-squares of an f32 (rows, C) tile."""
    return jnp.concatenate(
        [jnp.sum(h, axis=0, keepdims=True),
         jnp.sum(h * h, axis=0, keepdims=True)], axis=0)[None]


# -----------------------------------------------------------------------------
# kernels
# -----------------------------------------------------------------------------
def _conv1x1_stats_kernel(x_ref, w_ref, h_ref, st_ref):
    # conv1 (1x1): one MXU matmul, bf16 operands, f32 accumulation.
    h = jnp.dot(x_ref[...].astype(jnp.bfloat16), w_ref[...],
                preferred_element_type=jnp.float32)
    h_ref[...] = h.astype(h_ref.dtype)          # bf16 writeback (HBM-bound stage)
    st_ref[...] = _partial_stats(h)             # stats from the f32 accumulator


def _bn_relu_conv1x1_stats_kernel(h_in_ref, scale_ref, shift_ref, w_ref,
                                  h_ref, st_ref):
    # BN2-apply + ReLU (f32, VPU) fused with conv3 (1x1 MXU matmul).
    a = jnp.maximum(h_in_ref[...].astype(jnp.float32) * scale_ref[...]
                    + shift_ref[...], 0.0)
    h = jnp.dot(a.astype(jnp.bfloat16), w_ref[...],
                preferred_element_type=jnp.float32)
    h_ref[...] = h.astype(h_ref.dtype)
    st_ref[...] = _partial_stats(h)


def _make_bn_relu_conv3x3_stats_kernel(TH, W, C):
    """BN1-apply + ReLU + 3x3 conv on one (TH, W) row-band of one image."""
    BAND = TH * W

    def kernel(band_ref, top_ref, bot_ref, scale_ref, shift_ref, w_ref,
               h_out_ref, st_ref, apad_ref, acc_ref):
        b = pl.program_id(1)
        nb = pl.num_programs(1)
        scale = scale_ref[...]
        shift = shift_ref[...]

        def bn_relu(v):
            return jnp.maximum(v.astype(jnp.float32) * scale + shift, 0.0)

        a_band = bn_relu(band_ref[...])                       # (TH*W, C) f32
        top = bn_relu(top_ref[...])                           # (W, C)
        bot = bn_relu(bot_ref[...])
        # Image boundary: zero the halo rows at the very top / bottom band.
        top = jnp.where(b == 0, 0.0, top)
        bot = jnp.where(b == nb - 1, 0.0, bot)

        # Zero-halo scratch: only the 1-pixel left/right columns are zeroed
        # each step (corners included); every other element is overwritten.
        zcol = jnp.zeros((TH + 2, 1, C), jnp.float32)
        apad_ref[:, pl.ds(0, 1), :] = zcol
        apad_ref[:, pl.ds(W + 1, 1), :] = zcol
        apad_ref[pl.ds(0, 1), pl.ds(1, W), :] = top.reshape(1, W, C)
        apad_ref[pl.ds(TH + 1, 1), pl.ds(1, W), :] = bot.reshape(1, W, C)
        apad_ref[pl.ds(1, TH), pl.ds(1, W), :] = a_band.reshape(TH, W, C)

        # 3x3 conv as 9 accumulated K=C MXU matmuls (statically shifted halo
        # views; no im2col concat, no roll). f32 VMEM accumulator.
        for t, (dy, dx) in enumerate([(dy, dx) for dy in range(3)
                                      for dx in range(3)]):
            tap = apad_ref[pl.ds(dy, TH), pl.ds(dx, W), :].reshape(BAND, C)
            contrib = jnp.dot(tap.astype(jnp.bfloat16), w_ref[t],
                              preferred_element_type=jnp.float32)
            if t == 0:
                acc_ref[...] = contrib
            else:
                acc_ref[...] += contrib

        h = acc_ref[...]
        h_out_ref[...] = h.astype(h_out_ref.dtype)
        st_ref[...] = _partial_stats(h)

    return kernel


def _bn_residual_relu_kernel(h_ref, x_ref, scale_ref, shift_ref, o_ref):
    # BN3-apply + identity residual + ReLU (all f32, VPU only).
    o_ref[...] = jnp.maximum(
        h_ref[...].astype(jnp.float32) * scale_ref[...] + shift_ref[...]
        + x_ref[...].astype(jnp.float32), 0.0)


# -----------------------------------------------------------------------------
# wrapper
# -----------------------------------------------------------------------------
def bottleneck_forward(x_nchw, params, row_tile=None):
    """Pallas forward pass. x_nchw: (N, C, H, W) f32 with C == planes*4."""
    w1, g1, b1, w2, g2, b2, w3, g3, b3 = params
    N, Cin, H, W = x_nchw.shape
    P = w1.shape[1]
    Cout = w3.shape[1]
    assert Cout == Cin, "identity residual requires inplanes == planes*4"
    assert W % 8 == 0, "halo row blocks assume W % 8 == 0"
    R = N * H * W
    Pp = _round_up(P, LANE)

    vmem_limit, default_rows = _select_tuning()
    if row_tile is None:
        row_tile = default_rows

    # --- layout glue: NCHW -> NHWC -> (N*H*W, C). Channels of x / residual /
    # output stay UNPADDED (only internal h1/h2 use the lane-padded width). ---
    x2d = jnp.transpose(x_nchw, (0, 2, 3, 1)).reshape(R, Cin)

    # Weights: lane-pad internal channel dims, pre-cast to bf16 (MXU operands).
    w1p = jnp.pad(w1, ((0, 0), (0, Pp - P))).astype(jnp.bfloat16)      # (Cin, Pp)
    w2p = jnp.pad(w2, ((0, 0), (0, 0), (0, Pp - P), (0, Pp - P)))
    w2p = w2p.reshape(9, Pp, Pp).astype(jnp.bfloat16)                  # (9, Pp, Pp)
    w3p = jnp.pad(w3, ((0, Pp - P), (0, 0))).astype(jnp.bfloat16)      # (Pp, Cout)

    g1p, b1p = _padvec(g1, Pp), _padvec(b1, Pp)
    g2p, b2p = _padvec(g2, Pp), _padvec(b2, Pp)

    # Tiling: row tiles for the 1x1 / elementwise stages, row-bands for the 3x3.
    TM = _pick_row_tile(R, row_tile)
    nt = R // TM
    TH = _pick_band(H, W, row_tile)
    nb = H // TH
    BAND = TH * W
    assert (BAND % 8 == 0) or (BAND == R), "band rows must be a multiple of 8"

    cparams1 = pltpu.CompilerParams(
        dimension_semantics=("parallel",), vmem_limit_bytes=vmem_limit)
    cparams2 = pltpu.CompilerParams(
        dimension_semantics=("parallel", "parallel"), vmem_limit_bytes=vmem_limit)

    # --- stage 1: conv1 (1x1) + partial BN1 stats ----------------------------
    h1, st1 = pl.pallas_call(
        _conv1x1_stats_kernel,
        grid=(nt,),
        in_specs=[pl.BlockSpec((TM, Cin), lambda i: (i, 0)),
                  pl.BlockSpec((Cin, Pp), lambda i: (0, 0))],
        out_specs=(pl.BlockSpec((TM, Pp), lambda i: (i, 0)),
                   pl.BlockSpec((1, 2, Pp), lambda i: (i, 0, 0))),
        out_shape=(jax.ShapeDtypeStruct((R, Pp), jnp.bfloat16),
                   jax.ShapeDtypeStruct((nt, 2, Pp), jnp.float32)),
        compiler_params=cparams1,
    )(x2d, w1p)
    scale1, shift1 = _stats_to_affine(st1, R, g1p, b1p)

    # --- stage 2: bn1+relu fused with conv2 (3x3), row-band tiled ------------
    # h1 is passed three times: main band + 1-row top halo + 1-row bottom halo
    # (halo block indices are clamped in-range; the kernel zeroes them at the
    # image boundary).
    band_spec = pl.BlockSpec((BAND, Pp), lambda n, b: (n * nb + b, 0))
    top_spec = pl.BlockSpec(
        (W, Pp), lambda n, b: (n * H + jnp.maximum(b * TH - 1, 0), 0))
    bot_spec = pl.BlockSpec(
        (W, Pp), lambda n, b: (n * H + jnp.minimum((b + 1) * TH, H - 1), 0))
    vec_spec2 = pl.BlockSpec((1, Pp), lambda n, b: (0, 0))

    h2, st2 = pl.pallas_call(
        _make_bn_relu_conv3x3_stats_kernel(TH, W, Pp),
        grid=(N, nb),
        in_specs=[band_spec, top_spec, bot_spec, vec_spec2, vec_spec2,
                  pl.BlockSpec((9, Pp, Pp), lambda n, b: (0, 0, 0))],
        out_specs=(pl.BlockSpec((BAND, Pp), lambda n, b: (n * nb + b, 0)),
                   pl.BlockSpec((1, 2, Pp), lambda n, b: (n * nb + b, 0, 0))),
        out_shape=(jax.ShapeDtypeStruct((R, Pp), jnp.bfloat16),
                   jax.ShapeDtypeStruct((N * nb, 2, Pp), jnp.float32)),
        scratch_shapes=[pltpu.VMEM((TH + 2, W + 2, Pp), jnp.float32),
                        pltpu.VMEM((BAND, Pp), jnp.float32)],
        compiler_params=cparams2,
    )(h1, h1, h1, scale1, shift1, w2p)
    scale2, shift2 = _stats_to_affine(st2, R, g2p, b2p)

    # --- stage 3: bn2+relu fused with conv3 (1x1) ----------------------------
    h3, st3 = pl.pallas_call(
        _bn_relu_conv1x1_stats_kernel,
        grid=(nt,),
        in_specs=[pl.BlockSpec((TM, Pp), lambda i: (i, 0)),
                  pl.BlockSpec((1, Pp), lambda i: (0, 0)),
                  pl.BlockSpec((1, Pp), lambda i: (0, 0)),
                  pl.BlockSpec((Pp, Cout), lambda i: (0, 0))],
        out_specs=(pl.BlockSpec((TM, Cout), lambda i: (i, 0)),
                   pl.BlockSpec((1, 2, Cout), lambda i: (i, 0, 0))),
        out_shape=(jax.ShapeDtypeStruct((R, Cout), jnp.bfloat16),
                   jax.ShapeDtypeStruct((nt, 2, Cout), jnp.float32)),
        compiler_params=cparams1,
    )(h2, scale2, shift2, w3p)
    scale3, shift3 = _stats_to_affine(st3, R, g3, b3)

    # --- stage 4: bn3 + identity residual + relu (true Cout columns only) ----
    out2d = pl.pallas_call(
        _bn_residual_relu_kernel,
        grid=(nt,),
        in_specs=[pl.BlockSpec((TM, Cout), lambda i: (i, 0)),
                  pl.BlockSpec((TM, Cin), lambda i: (i, 0)),
                  pl.BlockSpec((1, Cout), lambda i: (0, 0)),
                  pl.BlockSpec((1, Cout), lambda i: (0, 0))],
        out_specs=pl.BlockSpec((TM, Cout), lambda i: (i, 0)),
        out_shape=jax.ShapeDtypeStruct((R, Cout), jnp.float32),
        compiler_params=cparams1,
    )(h3, x2d, scale3, shift3)

    # --- layout glue back: (R, C) -> NHWC -> NCHW ----------------------------
    out = out2d.reshape(N, H, W, Cout)
    return jnp.transpose(out, (0, 3, 1, 2))


# -----------------------------------------------------------------------------
# pure-JAX reference (PyTorch training-mode forward semantics)
# -----------------------------------------------------------------------------
def bottleneck_ref(x_nchw, params, mxu_bf16=True):
    """mxu_bf16=True mirrors the kernel's bf16-operand / f32-accumulate MXU."""
    w1, g1, b1, w2, g2, b2, w3, g3, b3 = params
    x = jnp.transpose(x_nchw, (0, 2, 3, 1))     # NHWC

    def bn(h, g, b):
        mean = jnp.mean(h, axis=(0, 1, 2), keepdims=True)
        var = jnp.mean((h - mean) ** 2, axis=(0, 1, 2), keepdims=True)
        return ((h - mean) * lax.rsqrt(var + BN_EPS)
                * g.reshape(1, 1, 1, -1) + b.reshape(1, 1, 1, -1))

    def conv(h, w, pad):
        if mxu_bf16:
            h = h.astype(jnp.bfloat16)
            w = w.astype(jnp.bfloat16)
        return lax.conv_general_dilated(
            h, w, (1, 1), pad, dimension_numbers=('NHWC', 'HWIO', 'NHWC'),
            preferred_element_type=jnp.float32)

    h = jax.nn.relu(bn(conv(x, w1.reshape(1, 1, *w1.shape), 'VALID'), g1, b1))
    h = jax.nn.relu(bn(conv(h, w2, 'SAME'), g2, b2))
    h = bn(conv(h, w3.reshape(1, 1, *w3.shape), 'VALID'), g3, b3)
    out = jax.nn.relu(h + x)
    return jnp.transpose(out, (0, 3, 1, 2))


# -----------------------------------------------------------------------------
if __name__ == "__main__":
    # Shapes implied by the module (stride=1, downsample=None):
    # inplanes must equal planes * expansion for the identity residual add.
    N, H, W = 2, 16, 16
    planes = 4
    inplanes = planes * 4                       # 16

    key = jax.random.PRNGKey(0)
    ks = jax.random.split(key, 10)
    x = jax.random.normal(ks[0], (N, inplanes, H, W), jnp.float32)

    # Deterministic synthetic parameters (weights in HWIO / (Cin, Cout) form).
    w1 = 0.1 * jax.random.normal(ks[1], (inplanes, planes), jnp.float32)
    w2 = 0.1 * jax.random.normal(ks[2], (3, 3, planes, planes), jnp.float32)
    w3 = 0.1 * jax.random.normal(ks[3], (planes, planes * 4), jnp.float32)
    g1 = 1.0 + 0.1 * jax.random.normal(ks[4], (planes,), jnp.float32)
    b1 = 0.1 * jax.random.normal(ks[5], (planes,), jnp.float32)
    g2 = 1.0 + 0.1 * jax.random.normal(ks[6], (planes,), jnp.float32)
    b2 = 0.1 * jax.random.normal(ks[7], (planes,), jnp.float32)
    g3 = 1.0 + 0.1 * jax.random.normal(ks[8], (planes * 4,), jnp.float32)
    b3 = 0.1 * jax.random.normal(ks[9], (planes * 4,), jnp.float32)
    params = (w1, g1, b1, w2, g2, b2, w3, g3, b3)

    out = jax.block_until_ready(bottleneck_forward(x, params))
    ref_bf16 = jax.block_until_ready(bottleneck_ref(x, params, mxu_bf16=True))
    ref_f32 = jax.block_until_ready(bottleneck_ref(x, params, mxu_bf16=False))

    assert out.shape == x.shape, (out.shape, x.shape)
    # Check against a precision-matched (bf16 MXU operands) reference.
    # Tolerance is looser than before because inter-stage activations are now
    # stored as bf16 in HBM (one extra rounding per stage before BN-apply).
    err_bf16 = float(jnp.max(jnp.abs(out - ref_bf16)))
    assert jnp.allclose(out, ref_bf16, rtol=3e-2, atol=3e-2), err_bf16
    # Looser sanity check against full-f32 math.
    err_f32 = float(jnp.max(jnp.abs(out - ref_f32)))
    assert jnp.allclose(out, ref_f32, rtol=8e-2, atol=8e-2), err_f32
    print("KERNEL_OK")
</pallas_src>

<mosaic_0001>
module attributes {stable_mosaic.version = 11 : i64} {
  func.func @_conv1x1_stats_kernel(%arg0: i32, %arg1: memref<256x16xf32, #tpu.memory_space<vmem>>, %arg2: memref<16x128xbf16, #tpu.memory_space<vmem>>, %arg3: memref<256x128xbf16, #tpu.memory_space<vmem>>, %arg4: memref<1x2x128xf32, #tpu.memory_space<vmem>>) attributes {dimension_semantics = [#tpu.dimension_semantics<parallel>], iteration_bounds = array<i64: 2>, scalar_prefetch = 0 : i64, scratch_operands = 0 : i64, tpu.core_type = #tpu.core_type<tc>, window_params = [{transform_indices = @transform_0, window_bounds = array<i64: 256, 16>}, {pipeline_mode = #tpu.pipeline_mode<synchronous>, transform_indices = @transform_1, window_bounds = array<i64: 16, 128>}, {transform_indices = @transform_2, window_bounds = array<i64: 256, 128>}, {transform_indices = @transform_3, window_bounds = array<i64: 1, 2, 128>}]} {
    %c0 = arith.constant 0 : index
    %c0_0 = arith.constant 0 : index
    %0 = vector.load %arg1[%c0, %c0_0] : memref<256x16xf32, #tpu.memory_space<vmem>>, vector<256x16xf32>
    %1 = arith.truncf %0 : vector<256x16xf32> to vector<256x16xbf16>
    %c0_1 = arith.constant 0 : index
    %c0_2 = arith.constant 0 : index
    %2 = vector.load %arg2[%c0_1, %c0_2] : memref<16x128xbf16, #tpu.memory_space<vmem>>, vector<16x128xbf16>
    %cst = arith.constant dense<0.000000e+00> : vector<256x128xf32>
    %3 = tpu.matmul %1, %2, %cst {dimension_numbers = #tpu.dot_dimension_numbers<[1], [0], [0], [1], [0, 0, 1, 1], [], []>} : vector<256x16xbf16>, vector<16x128xbf16>, vector<256x128xf32> -> vector<256x128xf32>
    %4 = arith.truncf %3 : vector<256x128xf32> to vector<256x128xbf16>
    %c0_3 = arith.constant 0 : index
    %c0_4 = arith.constant 0 : index
    %5 = vector.load %arg3[%c0_3, %c0_4] : memref<256x128xbf16, #tpu.memory_space<vmem>>, vector<256x128xbf16>
    tpu.vector_store %arg3[%c0_3, %c0_4], %4 {strides = array<i32>} : memref<256x128xbf16, #tpu.memory_space<vmem>>, vector<256x128xbf16>,
    %cst_5 = arith.constant dense<0.000000e+00> : vector<128xf32>
    %6 = vector.multi_reduction <add>, %3, %cst_5 [0] : vector<256x128xf32> to vector<128xf32>
    %7 = vector.shape_cast %6 : vector<128xf32> to vector<1x128xf32>
    %8 = arith.mulf %3, %3 : vector<256x128xf32>
    %cst_6 = arith.constant dense<0.000000e+00> : vector<128xf32>
    %9 = vector.multi_reduction <add>, %8, %cst_6 [0] : vector<256x128xf32> to vector<128xf32>
    %10 = vector.shape_cast %9 : vector<128xf32> to vector<1x128xf32>
    %11 = tpu.concatenate %7, %10 in 0 : vector<1x128xf32>, vector<1x128xf32> -> vector<2x128xf32>
    %12 = vector.shape_cast %11 : vector<2x128xf32> to vector<1x2x128xf32>
    %c0_7 = arith.constant 0 : index
    %c0_8 = arith.constant 0 : index
    %c0_9 = arith.constant 0 : index
    %13 = vector.load %arg4[%c0_7, %c0_8, %c0_9] : memref<1x2x128xf32, #tpu.memory_space<vmem>>, vector<1x2x128xf32>
    tpu.vector_store %arg4[%c0_7, %c0_8, %c0_9], %12 {strides = array<i32>} : memref<1x2x128xf32, #tpu.memory_space<vmem>>, vector<1x2x128xf32>,
    return
  }
  func.func @transform_0(%arg0: i32) -> (i32, i32) {
    %c0_i32 = arith.constant 0 : i32
    %c0_i32_0 = arith.constant 0 : i32
    return %arg0, %c0_i32 : i32, i32
  }
  func.func @transform_1(%arg0: i32) -> (i32, i32) {
    %c0_i32 = arith.constant 0 : i32
    %c0_i32_0 = arith.constant 0 : i32
    %c0_i32_1 = arith.constant 0 : i32
    return %c0_i32, %c0_i32_0 : i32, i32
  }
  func.func @transform_2(%arg0: i32) -> (i32, i32) {
    %c0_i32 = arith.constant 0 : i32
    %c0_i32_0 = arith.constant 0 : i32
    return %arg0, %c0_i32 : i32, i32
  }
  func.func @transform_3(%arg0: i32) -> (i32, i32, i32) {
    %c0_i32 = arith.constant 0 : i32
    %c0_i32_0 = arith.constant 0 : i32
    %c0_i32_1 = arith.constant 0 : i32
    return %arg0, %c0_i32, %c0_i32_0 : i32, i32, i32
  }
}

</mosaic_0001>

<bundles_post_ra>
// kernel: tpu_custom_call.1
= control target key start
LH: loop header
LB: loop body
LE: loop exit
PB: predicated region body
PF: predicated region fallthrough
CT: control target
= control target key end

     0   :  { %9 = vsyncpa [#allocation3], 0  ;;  %s1565_s0 = inlined_call_operand.vmem [shape: f32[512,16], index: 0, kind: input, shape index: {}]   ;;  %s1566_s1 = inlined_call_operand.vmem [shape: bf16[16,128], index: 1, kind: input, shape index: {}]   ;;  %s1567_s2 = inlined_call_operand.hbm [shape: bf16[512,128], index: 2, kind: output, shape index: {0}]   ;;  %s1568_s3 = inlined_call_operand.hbm [shape: f32[2,2,128], index: 3, kind: output, shape index: {1}]  }
   0x1   :  { %11 = vsyncpa [#allocation3 + $0x1], 0 }
   0x2   :  { %12 = vsyncpa [#allocation5], 0 }
   0x3   :  { %14 = vsyncpa [#allocation5 + $0x1], 0  ;;  %s1257_s12 = smov 0   ;;  %s1259_s13 = smov 0  }
   0x4   :  { %s1261_s14 = smov 0   ;;  %s1263_s15 = smov 0  }
   0x5 LB: > { %s1278_s16 = sadd.s32 4294967295, %s1231_s15   ;;  %s845_s17 = sadd.s32 4294967294, %s1231_s15   ;;  %s1231_s15 = sphi %s1263_s15, %s1574_s15   ;;  %s1227_s14 = sphi %s1261_s14, %s1573_s14   ;;  %s1223_s13 = sphi %s1259_s13, %s1572_s13   ;;  %s1219_s12 = sphi %s1257_s12, %s1571_s12  }
   0x6   : > { %s1282_s18 = sadd.s32 1, %s1231_s15   ;;  %s74_s19 = sadd.s32 1, %s1227_s14 }
   0x7   : > { %s71_s20 = ssub.s32 %s1231_s15, %s1282_s18  ;;  %p84_p0 = scmp.ne.s32.totalorder %s1227_s14, %s1223_s13 }
   0x8   : > { %p72_p1 = scmp.eq.s32.totalorder %s71_s20, 0  ;;  %p85_p2 = scmp.eq.s32.totalorder %s1278_s16, 1 }
   0x9   : > { %p90_p3 = scmp.ne.s32.totalorder %s1223_s13, %s1219_s12  ;;  %p91_p4 = scmp.eq.s32.totalorder %s845_s17, 1 }
   0xa   : > { %s1293_s21 = scalar_select %p72_p1, %s1227_s14, %s74_s19  }
   0xb   : > { %p1295_p5 = por %p85_p2, %p84_p0  ;;  %p1299_p6 = por %p91_p4, %p90_p3 }
   0xc   : > { %p848_p7 = scmp.ge.s32.totalorder %s1231_s15, 1  ;;  %p147_p8 = scmp.lt.s32.totalorder %s1231_s15, 3 }
   0xe   : > { %p148_p9 = pnand %p848_p7, %p147_p8 }
   0xf   : > { %v1136_v0 = vld [vmem:[%s1566_s1] sm:$0xff] (!%p148_p9)   ;;  %s1309_s26 = sshll.u32 (!%p148_p9), %s1278_s16, 5  ;;  %vm240_vm0 = vcmask (!%p148_p9), 130048   ;;  %s1367_s5 = sand.u32 (!%p148_p9), 1, %s1223_s13  }
  0x10   : > { %151 = sbr.rel (%p148_p9) target bundleno = 348 (0x15c), region = 28  ;;  %p177_p10 = scmp.lt.s32.totalorder (!%p148_p9), %s1309_s26, 63  ;;  %1054 = vmatprep.subr.bf16.mxu0 (!%p148_p9), %v1136_v0  ;;  %1088 = vmatprep.subr.bf16.mxu1 (!%p148_p9), %v1136_v0 }
  0x11   : > { %1055 = vmatpush3.bf16.msra.mxu0 (!%p148_p9), %v1136_v0  ;;  %1089 = vmatpush3.bf16.msra.mxu1 (!%p148_p9), %v1136_v0  ;;  %s849_s6 = sshll.u32 (!%p148_p9), %s1367_s5, 7  ;;  %s941_s8 = sshll.u32 (!%p148_p9), %s1278_s16, 11 }
  0x12   : > { %s1370_s7 = scalar_lea.vmem (!%p148_p9), [#allocation2], %s849_s6  ;;  %s1439_s16 = scalar_lea.hbm (!%p148_p9), %s1567_s2, %s941_s8 }
  0x13   : > { %s738_s9 = sshll.u32 (!%p148_p9), %s1370_s7, 4  ;;  %s720_s17 = scalar_lea.sflag (!%p148_p9), [#allocation3], %s1367_s5  ;;  %s1441_s9 = int_to_ptr.vmem [resolvable:$true] %s738_s9 }
  0x14   : > { %s1137_s19 = scalar_lea.vmem (!%p148_p9), %s1441_s9, 2048  ;;  %s1233_s20 = smov (!%p148_p9), [#allocation2]  }
  0x15   : > { %p1138_p11 = scmp.ne.s32.totalorder (!%p148_p9), %s1441_s9, %s1137_s19  ;;  %s1141_s24 = sshll.u32 (!%p148_p9), %s1233_s20, 4  ;;  %s1142_s24 = int_to_ptr.vmem [resolvable:$false] %s1141_s24 }
  0x16   : > { %s1143_s25 = scalar_lea.vmem (!%p148_p9), %s1142_s24, 4096  ;;  %p1144_p0 = scmp.lt.s32.totalorder (!%p148_p9), %s1441_s9, %s1142_s24 }
  0x17   : > { %s178_s27 = scalar_select %p177_p10, %s1309_s26, 63 }
  0x18   : > { %p1139_p12 = pnand %p1138_p11, %p1295_p5  ;;  %p1145_p1 = scmp.lt.s32.totalorder %s1143_s25, %s1137_s19 }
  0x19   : > { %s852_s28 = sshll.u32 %s178_s27, 3 }
  0x1a   : > { %s1316_s4 = scalar_lea.vmem %s1565_s0, %s852_s28  ;;  %p1140_p13 = pneg %p1139_p12 }
  0x1b   : > { %v184_v1 = vld [vmem:[%s1316_s4] sm:$0xff]  ;;  %v185_v2 = vld [vmem:[%s1316_s4 + $0x8] sm:$0xff]  ;;  %v186_v3 = vld [vmem:[%s1316_s4 + $0x10] sm:$0xff]  ;;  %p1146_p2 = por %p1145_p1, %p1144_p0 }
  0x1c   : > { %v216_v4 = vpack.c.bf16 %v185_v2, %v184_v1  ;;  %v187_v5 = vld [vmem:[%s1316_s4 + $0x18] sm:$0xff]  ;;  %v188_v6 = vld [vmem:[%s1316_s4 + $0x20] sm:$0xff]  ;;  %v189_v7 = vld [vmem:[%s1316_s4 + $0x28] sm:$0xff] }
  0x1d   : > { %v217_v8 = vpack.c.bf16 %v187_v5, %v186_v3  ;;  %v218_v9 = vpack.c.bf16 %v189_v7, %v188_v6  ;;  %v190_v10 = vld [vmem:[%s1316_s4 + $0x30] sm:$0xff]  ;;  %v191_v11 = vld [vmem:[%s1316_s4 + $0x38] sm:$0xff]  ;;  %v192_v12 = vld [vmem:[%s1316_s4 + $0x40] sm:$0xff]  ;;  %p1147_p3 = pnand %p1146_p2, %p1140_p13 }
  0x1e   : > { %1056 = vmatprep.mubr.msk.bf16.mxu0 %vm240_vm0, %v216_v4  ;;  %v193_v13 = vld [vmem:[%s1316_s4 + $0x48] sm:$0xff]  ;;  %v200_v14 = vld [vmem:[%s1316_s4 + $0x80] sm:$0xff]  ;;  %v202_v17 = vld [vmem:[%s1316_s4 + $0x90] sm:$0xff]  ;;  %v219_v22 = vpack.c.bf16 %v191_v11, %v190_v10 }
  0x1f   : > { %1057 = vmatmul.mubr.msk.bf16.vlgmr.msra.gmra.mrb[0].mxu0 %vm240_vm0, %v217_v8  ;;  %v201_v15 = vld [vmem:[%s1316_s4 + $0x88] sm:$0xff]  ;;  %v203_v18 = vld [vmem:[%s1316_s4 + $0x98] sm:$0xff]  ;;  %v204_v19 = vld [vmem:[%s1316_s4 + $0xa0] sm:$0xff]  ;;  %v220_v24 = vpack.c.bf16 %v193_v13, %v192_v12 }
  0x20   : > { %1060 = vmatprep.mubr.msk.bf16.mxu0 %vm240_vm0, %v218_v9  ;;  %v224_v16 = vpack.c.bf16 %v201_v15, %v200_v14  ;;  %v225_v20 = vpack.c.bf16 %v203_v18, %v202_v17  ;;  %v205_v21 = vld [vmem:[%s1316_s4 + $0xa8] sm:$0xff]  ;;  %v206_v25 = vld [vmem:[%s1316_s4 + $0xb0] sm:$0xff]  ;;  %v207_v26 = vld [vmem:[%s1316_s4 + $0xb8] sm:$0xff] }
  0x21   : > { %v226_v23 = vpack.c.bf16 %v205_v21, %v204_v19  ;;  %v208_v27 = vld [vmem:[%s1316_s4 + $0xc0] sm:$0xff]  ;;  %v209_v28 = vld [vmem:[%s1316_s4 + $0xc8] sm:$0xff]  ;;  %v194_v29 = vld [vmem:[%s1316_s4 + $0x50] sm:$0xff]  ;;  %v227_v31 = vpack.c.bf16 %v207_v26, %v206_v25 }
  0x22   : > { %1072 = vmatprep.mubr.msk.bf16.mxu1 %vm240_vm0, %v224_v16  ;;  %v195_v30 = vld [vmem:[%s1316_s4 + $0x58] sm:$0xff]  ;;  %v196_v32 = vld [vmem:[%s1316_s4 + $0x60] sm:$0xff]  ;;  %v197_v33 = vld [vmem:[%s1316_s4 + $0x68] sm:$0xff]  ;;  %v228_v34 = vpack.c.bf16 %v209_v28, %v208_v27 }
  0x23   : > { %1073 = vmatmul.mubr.msk.bf16.vlgmr.msra.gmra.mrb[0].mxu1 %vm240_vm0, %v225_v20  ;;  %v221_v35 = vpack.c.bf16 %v195_v30, %v194_v29  ;;  %v222_v36 = vpack.c.bf16 %v197_v33, %v196_v32  ;;  %v210_v37 = vld [vmem:[%s1316_s4 + $0xd0] sm:$0xff]  ;;  %v211_v38 = vld [vmem:[%s1316_s4 + $0xd8] sm:$0xff]  ;;  %v212_v39 = vld [vmem:[%s1316_s4 + $0xe0] sm:$0xff] }
  0x24   : > { %1076 = vmatprep.mubr.msk.bf16.mxu1 %vm240_vm0, %v226_v23  ;;  %v213_v40 = vld [vmem:[%s1316_s4 + $0xe8] sm:$0xff]  ;;  %v198_v41 = vld [vmem:[%s1316_s4 + $0x70] sm:$0xff]  ;;  %v199_v42 = vld [vmem:[%s1316_s4 + $0x78] sm:$0xff]  ;;  %v229_v43 = vpack.c.bf16 %v211_v38, %v210_v37 }
  0x25   : > { %v230_v44 = vpack.c.bf16 %v213_v40, %v212_v39  ;;  %v223_v45 = vpack.c.bf16 %v199_v42, %v198_v41  ;;  %v214_v46 = vld [vmem:[%s1316_s4 + $0xf0] sm:$0xff]  ;;  %v215_v47 = vld [vmem:[%s1316_s4 + $0xf8] sm:$0xff] }
  0x26   : > { %v231_v48 = vpack.c.bf16 %v215_v47, %v214_v46 }
  0x27   : > { %1061 = vmatmul.mubr.msk.bf16.gmra.mrb[4].mxu0 %vm240_vm0, %v219_v22 }
  0x28   : > { %1064 = vmatprep.mubr.msk.bf16.mxu0 %vm240_vm0, %v220_v24 }
  0x2b   : > { %1077 = vmatmul.mubr.msk.bf16.gmra.mrb[4].mxu1 %vm240_vm0, %v227_v31 }
  0x2c   : > { %1080 = vmatprep.mubr.msk.bf16.mxu1 %vm240_vm0, %v228_v34 }
  0x2f   : > { %1065 = vmatmul.mubr.msk.bf16.gmra.mrb[8].mxu0 %vm240_vm0, %v221_v35 }
  0x30   : > { %1068 = vmatprep.mubr.msk.bf16.mxu0 %vm240_vm0, %v222_v36 }
  0x33   : > { %1081 = vmatmul.mubr.msk.bf16.gmra.mrb[8].mxu1 %vm240_vm0, %v229_v43 }
  0x34   : > { %1084 = vmatprep.mubr.msk.bf16.mxu1 %vm240_vm0, %v230_v44 }
  0x37   : > { %1069 = vmatmul.mubr.msk.bf16.gmra.mrb[12].mxu0 %vm240_vm0, %v223_v45 }
  0x3b   : > { %1085 = vmatmul.mubr.msk.bf16.gmra.mrb[12].mxu1 %vm240_vm0, %v231_v48 }
  0xf2   : > { %v1058_v49 = vpop.f32.mrb[0].mxu0 }
  0xf3   : > { %v323_v50 = vpop.f32.mrb[1].mxu0  ;;  %v649_v59 = vmul.f32 %v1058_v49, %v1058_v49 }
  0xf4   : > { %v1059_v51 = vpop.f32.mrb[2].mxu0  ;;  %v647_v54 = vmul.f32 %v323_v50, %v323_v50 }
  0xf5   : > { %v950_v52 = vpack.c.bf16 %v1059_v51, %v1058_v49  ;;  %v326_v53 = vpop.f32.mrb[3].mxu0  ;;  %v650_v0 = vmul.f32 %v1059_v51, %v1059_v51 }
  0xf6   : > { %v945_v55 = vpack.c.bf16 %v326_v53, %v323_v50  ;;  %v610_v56 = vadd.f32 %v326_v53, %v323_v50  ;;  %v648_v57 = vmul.f32 %v326_v53, %v326_v53  ;;  %v1373_v58 = vpop.f32.mrb[0].mxu1 }
  0xf7   : > { %1022 = vst [vmem:[%s1370_s7 + $0x8] sm:$0xff] %v950_v52   ;;  %v1376_v62 = vpop.f32.mrb[1].mxu1 }
  0xf8   : > { %946 = vst [vmem:[%s1370_s7] sm:$0xff] %v945_v55   ;;  %v611_v60 = vadd.f32 %v1058_v49, %v610_v56  ;;  %v679_v61 = vadd.f32 %v648_v57, %v647_v54  ;;  %v1378_v63 = vpop.f32.mrb[2].mxu1 }
  0xf9   : > { %v990_v4 = vpack.c.bf16 %v1378_v63, %v1373_v58  ;;  %v1382_v5 = vpop.f32.mrb[3].mxu1 }
  0xfa   : > { %v680_v1 = vadd.f32 %v679_v61, %v649_v59  ;;  %v1062_v2 = vpop.f32.mrb[4].mxu0  ;;  %v612_v3 = vadd.f32 %v1059_v51, %v611_v60  ;;  %v985_v7 = vpack.c.bf16 %v1382_v5, %v1376_v62 }
  0xfb   : > { %v339_v6 = vpop.f32.mrb[5].mxu0  ;;  %1030 = vst [vmem:[%s1370_s7 + $0x48] sm:$0xff] %v990_v4   ;;  %v653_v19 = vmul.f32 %v1062_v2, %v1062_v2 }
  0xfc   : > { %v613_v8 = vadd.f32 %v612_v3, %v339_v6  ;;  %v651_v9 = vmul.f32 %v339_v6, %v339_v6  ;;  %v681_v10 = vadd.f32 %v680_v1, %v650_v0  ;;  %v1063_v11 = vpop.f32.mrb[6].mxu0  ;;  %1029 = vst [vmem:[%s1370_s7 + $0x40] sm:$0xff] %v985_v7  }
  0xfd   : > { %v960_v12 = vpack.c.bf16 %v1063_v11, %v1062_v2  ;;  %v342_v13 = vpop.f32.mrb[7].mxu0  ;;  %v654_v24 = vmul.f32 %v1063_v11, %v1063_v11 }
  0xfe   : > { %v682_v14 = vadd.f32 %v681_v10, %v651_v9  ;;  %v955_v15 = vpack.c.bf16 %v342_v13, %v339_v6  ;;  %v614_v16 = vadd.f32 %v613_v8, %v342_v13  ;;  %v652_v17 = vmul.f32 %v342_v13, %v342_v13  ;;  %v1389_v18 = vpop.f32.mrb[4].mxu1 }
  0xff   : > { %1024 = vst [vmem:[%s1370_s7 + $0x18] sm:$0xff] %v960_v12   ;;  %v1392_v22 = vpop.f32.mrb[5].mxu1 }
 0x100   : > { %1023 = vst [vmem:[%s1370_s7 + $0x10] sm:$0xff] %v955_v15   ;;  %v615_v20 = vadd.f32 %v1062_v2, %v614_v16  ;;  %v683_v21 = vadd.f32 %v682_v14, %v652_v17  ;;  %v1394_v23 = vpop.f32.mrb[6].mxu1 }
 0x101   : > { %v1000_v28 = vpack.c.bf16 %v1394_v23, %v1389_v18  ;;  %v1398_v29 = vpop.f32.mrb[7].mxu1 }
 0x102   : > { %v684_v25 = vadd.f32 %v683_v21, %v653_v19  ;;  %v1066_v26 = vpop.f32.mrb[8].mxu0  ;;  %v616_v27 = vadd.f32 %v1063_v11, %v615_v20  ;;  %v995_v31 = vpack.c.bf16 %v1398_v29, %v1392_v22  ;;  %v663_v11 = vmul.f32 %v1376_v62, %v1376_v62 }
 0x103   : > { %v355_v30 = vpop.f32.mrb[9].mxu0  ;;  %1032 = vst [vmem:[%s1370_s7 + $0x58] sm:$0xff] %v1000_v28   ;;  %v657_v43 = vmul.f32 %v1066_v26, %v1066_v26 }
 0x104   : > { %v617_v32 = vadd.f32 %v616_v27, %v355_v30  ;;  %v655_v33 = vmul.f32 %v355_v30, %v355_v30  ;;  %v685_v34 = vadd.f32 %v684_v25, %v654_v24  ;;  %v1067_v35 = vpop.f32.mrb[10].mxu0  ;;  %1031 = vst [vmem:[%s1370_s7 + $0x50] sm:$0xff] %v995_v31  }
 0x105   : > { %v970_v36 = vpack.c.bf16 %v1067_v35, %v1066_v26  ;;  %v358_v37 = vpop.f32.mrb[11].mxu0  ;;  %v658_v48 = vmul.f32 %v1067_v35, %v1067_v35 }
 0x106   : > { %v686_v38 = vadd.f32 %v685_v34, %v655_v33  ;;  %v965_v39 = vpack.c.bf16 %v358_v37, %v355_v30  ;;  %v618_v40 = vadd.f32 %v617_v32, %v358_v37  ;;  %v656_v41 = vmul.f32 %v358_v37, %v358_v37  ;;  %v1405_v42 = vpop.f32.mrb[8].mxu1 }
 0x107   : > { %1026 = vst [vmem:[%s1370_s7 + $0x28] sm:$0xff] %v970_v36   ;;  %v1408_v46 = vpop.f32.mrb[9].mxu1 }
 0x108   : > { %1025 = vst [vmem:[%s1370_s7 + $0x20] sm:$0xff] %v965_v39   ;;  %v619_v44 = vadd.f32 %v1066_v26, %v618_v40  ;;  %v687_v45 = vadd.f32 %v686_v38, %v656_v41  ;;  %v1410_v47 = vpop.f32.mrb[10].mxu1  ;;  %v664_v26 = vmul.f32 %v1382_v5, %v1382_v5 }
 0x109   : > { %v1010_v52 = vpack.c.bf16 %v1410_v47, %v1405_v42  ;;  %v1414_v53 = vpop.f32.mrb[11].mxu1 }
 0x10a   : > { %v688_v49 = vadd.f32 %v687_v45, %v657_v43  ;;  %v1070_v50 = vpop.f32.mrb[12].mxu0  ;;  %v620_v51 = vadd.f32 %v1067_v35, %v619_v44  ;;  %v1005_v55 = vpack.c.bf16 %v1414_v53, %v1408_v46 }
 0x10b   : > { %v371_v54 = vpop.f32.mrb[13].mxu0  ;;  %1034 = vst [vmem:[%s1370_s7 + $0x68] sm:$0xff] %v1010_v52   ;;  %v661_v7 = vmul.f32 %v1070_v50, %v1070_v50 }
 0x10c   : > { %v621_v56 = vadd.f32 %v620_v51, %v371_v54  ;;  %v659_v57 = vmul.f32 %v371_v54, %v371_v54  ;;  %v689_v59 = vadd.f32 %v688_v49, %v658_v48  ;;  %v1071_v60 = vpop.f32.mrb[14].mxu0  ;;  %1033 = vst [vmem:[%s1370_s7 + $0x60] sm:$0xff] %v1005_v55  }
 0x10d   : > { %v980_v61 = vpack.c.bf16 %v1071_v60, %v1070_v50  ;;  %v374_v0 = vpop.f32.mrb[15].mxu0  ;;  %v662_v13 = vmul.f32 %v1071_v60, %v1071_v60 }
 0x10e   : > { %v690_v1 = vadd.f32 %v689_v59, %v659_v57  ;;  %v975_v2 = vpack.c.bf16 %v374_v0, %v371_v54  ;;  %v622_v3 = vadd.f32 %v621_v56, %v374_v0  ;;  %v660_v4 = vmul.f32 %v374_v0, %v374_v0  ;;  %v1421_v6 = vpop.f32.mrb[12].mxu1 }
 0x10f   : > { %1028 = vst [vmem:[%s1370_s7 + $0x38] sm:$0xff] %v980_v61   ;;  %v1426_v10 = vpop.f32.mrb[13].mxu1 }
 0x110   : > { %1027 = vst [vmem:[%s1370_s7 + $0x30] sm:$0xff] %v975_v2   ;;  %v623_v8 = vadd.f32 %v1070_v50, %v622_v3  ;;  %v691_v9 = vadd.f32 %v690_v1, %v660_v4  ;;  %v1430_v12 = vpop.f32.mrb[14].mxu1 }
 0x111   : > { %v1020_v16 = vpack.c.bf16 %v1430_v12, %v1421_v6  ;;  %v1434_v17 = vpop.f32.mrb[15].mxu1 }
 0x112   : > { %v692_v14 = vadd.f32 %v691_v9, %v661_v7  ;;  %v624_v15 = vadd.f32 %v1071_v60, %v623_v8  ;;  %v1015_v19 = vpack.c.bf16 %v1434_v17, %v1426_v10 }
 0x113   : > { %1036 = vst [vmem:[%s1370_s7 + $0x78] sm:$0xff] %v1020_v16  }
 0x114   : > { %v625_v20 = vadd.f32 %v624_v15, %v1376_v62  ;;  %v693_v21 = vadd.f32 %v692_v14, %v662_v13  ;;  %1035 = vst [vmem:[%s1370_s7 + $0x70] sm:$0xff] %v1015_v19  }
 0x116   : > { %v694_v24 = vadd.f32 %v693_v21, %v663_v11  ;;  %v626_v25 = vadd.f32 %v625_v20, %v1382_v5 }
 0x117   : > { %1150 = shalt.err (!%p1147_p3)
}
 0x118   : > { %s1151_s27 = scalar_lea.hbm %s1439_s16, 2048  ;;  %s1155_s30 = scalar_lea.hbm %s1567_s2, 4096 }
 0x119   : > { %p1152_p4 = scmp.ne.s32.totalorder %s1439_s16, %s1151_s27  ;;  %p1156_p9 = scmp.lt.u32.totalorder %s1439_s16, %s1567_s2 }
 0x11a   : > { %p1157_p10 = scmp.lt.u32.totalorder %s1155_s30, %s1151_s27  ;;  %p1159_p12 = scmp.lt.u32.totalorder %s1151_s27, %s1439_s16 }
 0x11b   : > { %p1153_p7 = pnand %p1152_p4, %p1295_p5 }
 0x11c   : > { %p1158_p11 = por %p1157_p10, %p1156_p9 }
 0x11d   : > { %p1154_p8 = pneg %p1153_p7 }
 0x11e   : > { %p1160_p13 = por %p1159_p12, %p1158_p11 }
 0x120   : > { %p1161_p0 = pnand %p1160_p13, %p1154_p8 }
 0x122   : > { %1164 = shalt.err (!%p1161_p0)
}
 0x123   : > { %s1234_s7 = smov 64   ;;  %s1235_s8 = smov 4   ;;  %v665_v62 = vmul.f32 %v1373_v58, %v1373_v58  ;;  %v627_v5 = vadd.f32 %v1373_v58, %v626_v25  ;;  %v695_v27 = vadd.f32 %v694_v24, %v664_v26  ;;  %v666_v28 = vmul.f32 %v1378_v63, %v1378_v63 }
 0x124   : > { %1090 = dma.vmem_to_hbm [thread:$0]  (%p1295_p5), %s1441_s9, 2048, %s1439_s16, %s720_s17, %s1234_s7, %s1234_s7, %s1235_s8   ;;  %v667_v32 = vmul.f32 %v1392_v22, %v1392_v22  ;;  %v668_v37 = vmul.f32 %v1398_v29, %v1398_v29  ;;  %v669_v58 = vmul.f32 %v1389_v18, %v1389_v18  ;;  %v672_v48 = vmul.f32 %v1414_v53, %v1414_v53 }
 0x125   : > { %v696_v30 = vadd.f32 %v695_v27, %v665_v62  ;;  %v628_v31 = vadd.f32 %v1378_v63, %v627_v5  ;;  %v670_v63 = vmul.f32 %v1394_v23, %v1394_v23  ;;  %v677_v57 = vmul.f32 %v1421_v6, %v1421_v6  ;;  %s850_s9 = sshll.u32 %s1367_s5, 1  ;;  %s1522_s19 = scalar_lea.hbm %s1568_s3, %s1309_s26 }
 0x126   : > { %s175_s10 = scalar_lea.vmem [#allocation4], %s850_s9  ;;  %vm716_vm1 = vcmask 1040384   ;;  %s725_s20 = scalar_lea.sflag [#allocation5], %s1367_s5 }
 0x127   : > { %v629_v33 = vadd.f32 %v628_v31, %v1392_v22  ;;  %v697_v34 = vadd.f32 %v696_v30, %v666_v28  ;;  %v671_v22 = vmul.f32 %v1408_v46, %v1408_v46  ;;  %s754_s11 = sshll.u32 %s175_s10, 4  ;;  %s1236_s25 = smov [#allocation4]   ;;  %s1524_s11 = int_to_ptr.vmem [resolvable:$true] %s754_s11 }
 0x128   : > { %s1165_s24 = scalar_lea.vmem %s1524_s11, 32  ;;  %s1169_s27 = sshll.u32 %s1236_s25, 4  ;;  %s1170_s27 = int_to_ptr.vmem [resolvable:$false] %s1169_s27 }
 0x129   : > { %v698_v35 = vadd.f32 %v697_v34, %v667_v32  ;;  %v630_v36 = vadd.f32 %v629_v33, %v1398_v29  ;;  %p1166_p1 = scmp.ne.s32.totalorder %s1524_s11, %s1165_s24  ;;  %s1171_s28 = scalar_lea.vmem %s1170_s27, 64 }
 0x12a   : > { %p1172_p4 = scmp.lt.s32.totalorder %s1524_s11, %s1170_s27  ;;  %p1173_p7 = scmp.lt.s32.totalorder %s1171_s28, %s1165_s24 }
 0x12b   : > { %v631_v38 = vadd.f32 %v1389_v18, %v630_v36  ;;  %v699_v39 = vadd.f32 %v698_v35, %v668_v37  ;;  %v673_v18 = vmul.f32 %v1405_v42, %v1405_v42  ;;  %p1167_p2 = pnand %p1166_p1, %p1295_p5 }
 0x12c   : > { %p1174_p8 = por %p1173_p7, %p1172_p4 }
 0x12d   : > { %v700_v40 = vadd.f32 %v699_v39, %v669_v58  ;;  %v632_v41 = vadd.f32 %v1394_v23, %v631_v38  ;;  %v674_v23 = vmul.f32 %v1410_v47, %v1410_v47  ;;  %p1168_p3 = pneg %p1167_p2 }
 0x12f   : > { %v633_v43 = vadd.f32 %v632_v41, %v1408_v46  ;;  %v701_v44 = vadd.f32 %v700_v40, %v670_v63  ;;  %v675_v46 = vmul.f32 %v1426_v10, %v1426_v10  ;;  %p1175_p9 = pnand %p1174_p8, %p1168_p3 }
 0x131   : > { %v702_v45 = vadd.f32 %v701_v44, %v671_v22  ;;  %v634_v29 = vadd.f32 %v633_v43, %v1414_v53 }
 0x133   : > { %v635_v49 = vadd.f32 %v1405_v42, %v634_v29  ;;  %v703_v50 = vadd.f32 %v702_v45, %v672_v48  ;;  %v676_v42 = vmul.f32 %v1434_v17, %v1434_v17 }
 0x135   : > { %v704_v51 = vadd.f32 %v703_v50, %v673_v18  ;;  %v636_v52 = vadd.f32 %v1410_v47, %v635_v49  ;;  %v678_v47 = vmul.f32 %v1430_v12, %v1430_v12 }
 0x137   : > { %v637_v54 = vadd.f32 %v636_v52, %v1426_v10  ;;  %v705_v55 = vadd.f32 %v704_v51, %v674_v23 }
 0x139   : > { %v706_v53 = vadd.f32 %v705_v55, %v675_v46  ;;  %v638_v56 = vadd.f32 %v637_v54, %v1434_v17 }
 0x13b   : > { %v639_v59 = vadd.f32 %v1421_v6, %v638_v56  ;;  %v707_v60 = vadd.f32 %v706_v53, %v676_v42 }
 0x13d   : > { %v640_v61 = vadd.f32 %v1430_v12, %v639_v59  ;;  %v708_v0 = vadd.f32 %v707_v60, %v677_v57 }
 0x13f   : > { %v641_v1 = vrot.slane %v640_v61, 4  ;;  %v709_v2 = vadd.f32 %v708_v0, %v678_v47 }
 0x141   : > { %v642_v3 = vadd.f32 %v641_v1, %v640_v61  ;;  %v710_v4 = vrot.slane %v709_v2, 4 }
 0x143   : > { %v643_v7 = vrot.slane %v642_v3, 2  ;;  %v711_v8 = vadd.f32 %v710_v4, %v709_v2 }
 0x145   : > { %v644_v9 = vadd.f32 %v643_v7, %v642_v3  ;;  %v712_v10 = vrot.slane %v711_v8, 2 }
 0x147   : > { %v645_v6 = vrot.slane %v644_v9, 1  ;;  %v713_v11 = vadd.f32 %v712_v10, %v711_v8 }
 0x149   : > { %v714_v13 = vrot.slane %v713_v11, 1  ;;  %v646_v12 = vadd.f32 %v645_v6, %v644_v9 }
 0x14b   : > { %v715_v14 = vadd.f32 %v714_v13, %v713_v11 }
 0x14d   : > { %v717_v15 = vsel %vm716_vm1, %v646_v12, %v715_v14 }
 0x14e   : > { %718 = vst [vmem:[%s175_s10] sm:$0x3] %v717_v15 }
 0x14f   : > { %1178 = shalt.err (!%p1175_p9)
}
 0x150   : > { %s1179_s26 = scalar_lea.hbm %s1522_s19, 32  ;;  %s1183_s30 = scalar_lea.hbm %s1568_s3, 64 }
 0x151   : > { %p1180_p10 = scmp.ne.s32.totalorder %s1522_s19, %s1179_s26  ;;  %p1184_p13 = scmp.lt.u32.totalorder %s1522_s19, %s1568_s3 }
 0x152   : > { %p1185_p0 = scmp.lt.u32.totalorder %s1183_s30, %s1179_s26  ;;  %p1187_p2 = scmp.lt.u32.totalorder %s1179_s26, %s1522_s19 }
 0x153   : > { %p1181_p11 = pnand %p1180_p10, %p1295_p5 }
 0x154   : > { %p1186_p1 = por %p1185_p0, %p1184_p13 }
 0x155   : > { %p1182_p12 = pneg %p1181_p11 }
 0x156   : > { %p1188_p3 = por %p1187_p2, %p1186_p1 }
 0x158   : > { %p1189_p4 = pnand %p1188_p3, %p1182_p12 }
 0x15a   : > { %1192 = shalt.err (!%p1189_p4)
}
 0x15b   : > { %1091 = dma.vmem_to_hbm [thread:$0]  (%p1295_p5), %s1524_s11, 32, %s1522_s19, %s725_s20  }
 0x15c PF: > { %p1101_p7 = scmp.ge.s32.totalorder %s1231_s15, 2  ;;  %s766_s7 = sand.u32 1, %s1219_s12  }
 0x15d   : > { %s767_s8 = scalar_lea.sflag [#allocation3], %s766_s7 }
 0x15e   : > { %p1095_p8 = pnand %p1101_p7, %p1299_p6 }
 0x160   : > { %1210 = dma.done.wait (!%p1095_p8), %s767_s8, 2048  }
 0x161   : > { %1212 = vsyncadd (!%p1095_p8), %s767_s8, 4294965248  ;;  %s776_s9 = scalar_lea.sflag [#allocation5], %s766_s7 }
 0x162   : > { %1214 = dma.done.wait (!%p1095_p8), %s776_s9, 32  }
 0x163   : > { %1216 = vsyncadd (!%p1095_p8), %s776_s9, 4294967264  ;;  %p17_p5 = scmp.ge.s32.totalorder %s1282_s18, 4   ;;  %s1571_s12 = smov %s1223_s13 }
 0x164   : > { %s1572_s13 = smov %s1227_s14  ;;  %s1573_s14 = smov %s1293_s21 }
 0x165   : > { %s1574_s15 = smov %s1282_s18  ;;  %19 = sbr.rel (!%p17_p5) target bundleno = 5 (0x5), region = 80 }
 0x16c   :  { %781 = vsyncpa [#allocation3], 1 }
 0x16d   :  { %783 = vsyncpa [#allocation3 + $0x1], 1 }
 0x16e   :  { %784 = vsyncpa [#allocation5], 1 }
 0x16f   :  { %786 = vsyncpa [#allocation5 + $0x1], 1 }

</bundles_post_ra>
